<compile_context>
chip_gen: v5e
topology: v5e:2x2
jax: 0.10.0
libtpu: 0.0.40
codegen_flags: <defaults>
</compile_context>

<pallas_src>
import functools

import jax
import jax.numpy as jnp
from jax import lax
from jax.experimental import pallas as pl
from jax.experimental.pallas import tpu as pltpu

LN_EPS = 1e-5  # nn.LayerNorm default
_MIB = 1024 * 1024


def _round_up(n, m):
    return ((n + m - 1) // m) * m


# ---------------------------------------------------------------------------
# Kernel
# ---------------------------------------------------------------------------
def _mlp_kernel(x_ref, w1_ref, ln_ref, w2_ref, b2_ref, o_ref, *, h_real):
    b1 = ln_ref[0:1, :]
    gamma = ln_ref[1:2, :]
    beta = ln_ref[2:3, :]

    # ---- Linear 1: bf16 operands on the MXU, f32 accumulation ----
    h = jnp.dot(x_ref[...], w1_ref[...],
                preferred_element_type=jnp.float32) + b1

    # ---- One-pass LayerNorm statistics ----
    # Padded hidden lanes of h are exactly 0 (zero-padded x cols / w1 cols / b1
    # entries), so plain sums over the padded axis equal sums over the real
    # lanes; divide by the real hidden size.
    inv_h = 1.0 / float(h_real)
    mean = jnp.sum(h, axis=-1, keepdims=True) * inv_h
    mean_sq = jnp.sum(h * h, axis=-1, keepdims=True) * inv_h
    var = jnp.maximum(mean_sq - mean * mean, 0.0)  # guard f32 cancellation
    # gamma/beta padding entries are 0 -> padded lanes stay 0 after the affine.
    h = (h - mean) * lax.rsqrt(var + LN_EPS) * gamma + beta

    # ---- ReLU (f32) then Linear 2 (bf16 operands, f32 accumulation) ----
    h_act = jnp.maximum(h, 0.0).astype(w2_ref.dtype)
    out = jnp.dot(h_act, w2_ref[...],
                  preferred_element_type=jnp.float32) + b2_ref[...]
    o_ref[...] = out.astype(o_ref.dtype)


# ---------------------------------------------------------------------------
# Chip / tiling heuristics
# ---------------------------------------------------------------------------
def _chip_profile():
    kind = ""
    try:
        kind = jax.devices()[0].device_kind.lower()
    except Exception:
        pass
    vmem_cap = None
    try:
        vmem_cap = int(pltpu.get_tpu_info().vmem_capacity_bytes)
    except Exception:
        pass
    known = bool(kind)
    is_v5 = "v5" in kind
    small_vmem = vmem_cap is not None and vmem_cap <= 64 * _MIB
    is_v7 = ("v7" in kind) or (small_vmem and not is_v5)
    vmem_limit = (vmem_cap * 3 // 4) if vmem_cap else 48 * _MIB
    return dict(
        known=known,
        is_v7=is_v7,
        tm_default=256 if (is_v7 or not known) else 512,
        prefer_256=known and not is_v5,   # v6e/v7x MXU tiles are 256x256
        even_steps=is_v7 or not known,    # keep both v7x TensorCores fed
        vmem_limit=int(vmem_limit),
    )


def _pad_dim(d, prefer_256):
    p128 = _round_up(d, 128)
    if prefer_256:
        p256 = _round_up(d, 256)
        # Only widen to 256-alignment if the extra padding is small vs. the dim.
        if p256 == p128 or (p256 - p128) * 3 <= p128:
            return p256
    return p128


def _shrink_tm_for_vmem(tm, c_in_p, h_p, c_out_p, out_itemsize, vmem_limit):
    # Resident bf16 weights + f32 constants (sublane-padded to 8 rows), worst
    # case double-buffered; activations double-buffered; f32 hidden live values.
    weights = 2 * (c_in_p * h_p + h_p * c_out_p)
    consts = 4 * 8 * (h_p + c_out_p)
    budget = int(vmem_limit * 0.9) - 2 * (weights + consts)
    while tm > 8:
        act = 2 * tm * c_in_p * 2 + 2 * tm * c_out_p * out_itemsize
        live = 2 * tm * h_p * 4
        if act + live <= budget:
            break
        tm = max(8, _round_up(tm // 2, 8))
    return tm


def _choose_row_tiling(m, tm_hint, even_steps):
    tm = max(8, min(_round_up(tm_hint, 8), _round_up(max(m, 8), 8)))
    steps = -(-m // tm)
    if even_steps:
        if steps < 2:
            tm = max(8, _round_up(-(-max(m, 2) // 2), 8))
            steps = -(-m // tm)
        if steps % 2 == 1:
            steps += 1
    steps = max(steps, 1)
    return tm, steps * tm


# ---------------------------------------------------------------------------
# Buffered(1) feature probe + narrow fallback error set
# ---------------------------------------------------------------------------
def _probe_pipeline_mode():
    buffered = getattr(pl, "Buffered", None)
    if buffered is None:
        return False
    try:
        pl.BlockSpec((8, 128), lambda i: (0, 0), pipeline_mode=buffered(1))
    except TypeError:
        return False
    return True


_PIPELINE_MODE_SUPPORTED = _probe_pipeline_mode()
_BUFFERED_WEIGHTS_OK = None  # cached outcome of the first single-buffered build


def _fallback_error_types():
    errs = [TypeError, ValueError, NotImplementedError]
    for obj in (getattr(pltpu, "LoweringException", None),
                getattr(getattr(jax, "errors", None), "JaxRuntimeError", None)):
        if isinstance(obj, type) and issubclass(obj, BaseException):
            errs.append(obj)
    return tuple(errs)


_FALLBACK_ERRORS = _fallback_error_types()


# ---------------------------------------------------------------------------
# pallas_call builder
# ---------------------------------------------------------------------------
def _build_call(*, tm, m_p, c_in_p, h_p, c_out_p, h_real, out_dtype,
                single_buffer_weights, vmem_limit, cost):
    # Constant-index blocks never change across the grid; double-buffering them
    # just wastes VMEM, so request a single buffer when supported.
    const_kwargs = dict(pipeline_mode=pl.Buffered(1)) if single_buffer_weights else {}

    def const_spec(shape):
        return pl.BlockSpec(shape, lambda i: (0, 0), **const_kwargs)

    kernel = functools.partial(_mlp_kernel, h_real=h_real)

    return pl.pallas_call(
        kernel,
        out_shape=jax.ShapeDtypeStruct((m_p, c_out_p), out_dtype),
        grid_spec=pltpu.PrefetchScalarGridSpec(
            num_scalar_prefetch=0,
            grid=(m_p // tm,),
            in_specs=[
                pl.BlockSpec((tm, c_in_p), lambda i: (i, 0)),   # x tile (bf16)
                const_spec((c_in_p, h_p)),                      # w1 (bf16)
                const_spec((3, h_p)),                           # b1/gamma/beta (f32)
                const_spec((h_p, c_out_p)),                     # w2 (bf16)
                const_spec((1, c_out_p)),                       # b2 (f32)
            ],
            out_specs=pl.BlockSpec((tm, c_out_p), lambda i: (i, 0)),
        ),
        compiler_params=pltpu.CompilerParams(
            dimension_semantics=("parallel",),
            vmem_limit_bytes=vmem_limit,
        ),
        cost_estimate=cost,
    )


# ---------------------------------------------------------------------------
# Public wrapper
# ---------------------------------------------------------------------------
def mlp_layer(x, w1, b1, gamma, beta, w2, b2, *, tm=None):
    """Fused MLPLayer forward.

    x:     (..., channel_in)
    w1:    (channel_in, hidden)      b1: (hidden,)
    gamma: (hidden,)                 beta: (hidden,)
    w2:    (hidden, channel_out)     b2: (channel_out,)
    returns (..., channel_out)
    """
    *lead, c_in = x.shape
    hidden = int(w1.shape[1])
    c_out = int(w2.shape[1])
    out_dtype = x.dtype

    prof = _chip_profile()
    if tm is None:
        tm = prof["tm_default"]

    x2d = x.reshape(-1, c_in)
    m = x2d.shape[0]

    # Lane-dense feature padding (128, or 256 on 256-wide-MXU parts when cheap).
    c_in_p = _pad_dim(c_in, prof["prefer_256"])
    h_p = _pad_dim(hidden, prof["prefer_256"])
    c_out_p = _pad_dim(c_out, prof["prefer_256"])

    out_itemsize = jnp.dtype(out_dtype).itemsize
    tm = _shrink_tm_for_vmem(tm, c_in_p, h_p, c_out_p, out_itemsize,
                             prof["vmem_limit"])
    tm, m_p = _choose_row_tiling(m, tm, prof["even_steps"])

    # Zero-pad and standardize operand dtypes in the wrapper: bf16 for the MXU
    # operands, f32 for bias / LayerNorm constants.  Zero padding keeps the
    # math exact; padded rows/cols are sliced off at the end.
    f32, bf16 = jnp.float32, jnp.bfloat16
    x2d_p = jnp.pad(x2d.astype(bf16), ((0, m_p - m), (0, c_in_p - c_in)))
    w1_p = jnp.pad(w1.astype(bf16), ((0, c_in_p - c_in), (0, h_p - hidden)))
    w2_p = jnp.pad(w2.astype(bf16), ((0, h_p - hidden), (0, c_out_p - c_out)))
    ln_p = jnp.pad(
        jnp.stack([b1.astype(f32), gamma.astype(f32), beta.astype(f32)], axis=0),
        ((0, 0), (0, h_p - hidden)))
    b2_p = jnp.pad(b2.astype(f32), ((0, c_out_p - c_out),)).reshape(1, c_out_p)

    args = (x2d_p, w1_p, ln_p, w2_p, b2_p)

    cost = pl.CostEstimate(
        flops=2 * m_p * (c_in_p * h_p + h_p * c_out_p),
        transcendentals=m_p,  # one rsqrt per row
        bytes_accessed=int(sum(a.size * a.dtype.itemsize for a in args)
                           + m_p * c_out_p * out_itemsize),
    )

    # TODO(synk): for hidden sizes whose bf16 weights exceed the scoped VMEM
    # budget (mainly v7x's 64 MiB), add a K-tiled grid axis over h_p with an
    # f32 accumulator scratch instead of fully-resident weights.
    build = functools.partial(
        _build_call, tm=tm, m_p=m_p, c_in_p=c_in_p, h_p=h_p, c_out_p=c_out_p,
        h_real=hidden, out_dtype=out_dtype, vmem_limit=prof["vmem_limit"],
        cost=cost)

    global _BUFFERED_WEIGHTS_OK
    out2d_p = None
    if _PIPELINE_MODE_SUPPORTED and _BUFFERED_WEIGHTS_OK is not False:
        try:
            out2d_p = build(single_buffer_weights=True)(*args)
            _BUFFERED_WEIGHTS_OK = True
        except _FALLBACK_ERRORS:
            # Only Buffered(1)-specific lowering failures land here; genuine
            # kernel errors resurface on the non-buffered path below.
            _BUFFERED_WEIGHTS_OK = False
    if out2d_p is None:
        out2d_p = build(single_buffer_weights=False)(*args)

    out2d = out2d_p[:m, :c_out]
    return out2d.reshape(*lead, c_out)


# ---------------------------------------------------------------------------
# Reference + demo
# ---------------------------------------------------------------------------
def _reference(x, w1, b1, gamma, beta, w2, b2):
    h = x @ w1 + b1
    mean = jnp.mean(h, axis=-1, keepdims=True)
    var = jnp.mean((h - mean) ** 2, axis=-1, keepdims=True)
    h = (h - mean) * lax.rsqrt(var + LN_EPS) * gamma + beta
    h = jnp.maximum(h, 0.0)
    return h @ w2 + b2


if __name__ == "__main__":
    # Small shapes consistent with the module: tokens from (batch=2, seq=8).
    batch, seq = 2, 8
    channel_in, hidden, channel_out = 32, 64, 16

    key = jax.random.PRNGKey(0)
    kx, k1, kb1, k2, kb2 = jax.random.split(key, 5)

    x = jax.random.normal(kx, (batch, seq, channel_in), dtype=jnp.float32)

    # Deterministic parameter init (shapes match nn.Linear / nn.LayerNorm).
    w1 = jax.random.normal(k1, (channel_in, hidden), dtype=jnp.float32) * 0.05
    b1 = jax.random.normal(kb1, (hidden,), dtype=jnp.float32) * 0.01
    gamma = jnp.ones((hidden,), dtype=jnp.float32)   # LayerNorm weight
    beta = jnp.zeros((hidden,), dtype=jnp.float32)   # LayerNorm bias
    w2 = jax.random.normal(k2, (hidden, channel_out), dtype=jnp.float32) * 0.05
    b2 = jax.random.normal(kb2, (channel_out,), dtype=jnp.float32) * 0.01

    out = mlp_layer(x, w1, b1, gamma, beta, w2, b2)
    out = jax.block_until_ready(out)

    ref = _reference(x, w1, b1, gamma, beta, w2, b2)
    assert out.shape == (batch, seq, channel_out)
    # bf16 MXU operands with f32 accumulation -> compare at bf16-level tolerance.
    max_err = float(jnp.max(jnp.abs(out - ref)))
    assert jnp.allclose(out, ref, atol=2.5e-2, rtol=2.5e-2), max_err

    print("KERNEL_OK")
</pallas_src>

<mosaic_0001>
module attributes {stable_mosaic.version = 11 : i64} {
  func.func @_mlp_kernel(%arg0: i32, %arg1: memref<16x128xbf16, #tpu.memory_space<vmem>>, %arg2: memref<128x128xbf16, #tpu.memory_space<vmem>>, %arg3: memref<3x128xf32, #tpu.memory_space<vmem>>, %arg4: memref<128x128xbf16, #tpu.memory_space<vmem>>, %arg5: memref<1x128xf32, #tpu.memory_space<vmem>>, %arg6: memref<16x128xf32, #tpu.memory_space<vmem>>) attributes {dimension_semantics = [#tpu.dimension_semantics<parallel>], iteration_bounds = array<i64: 1>, scalar_prefetch = 0 : i64, scratch_operands = 0 : i64, tpu.core_type = #tpu.core_type<tc>, window_params = [{transform_indices = @transform_0, window_bounds = array<i64: 16, 128>}, {pipeline_mode = #tpu.pipeline_mode<synchronous>, transform_indices = @transform_1, window_bounds = array<i64: 128, 128>}, {pipeline_mode = #tpu.pipeline_mode<synchronous>, transform_indices = @transform_2, window_bounds = array<i64: 3, 128>}, {pipeline_mode = #tpu.pipeline_mode<synchronous>, transform_indices = @transform_3, window_bounds = array<i64: 128, 128>}, {pipeline_mode = #tpu.pipeline_mode<synchronous>, transform_indices = @transform_4, window_bounds = array<i64: 1, 128>}, {transform_indices = @transform_5, window_bounds = array<i64: 16, 128>}]} {
    %c0 = arith.constant 0 : index
    %c0_0 = arith.constant 0 : index
    %0 = vector.load %arg3[%c0, %c0_0] : memref<3x128xf32, #tpu.memory_space<vmem>>, vector<1x128xf32>
    %c1 = arith.constant 1 : index
    %c0_1 = arith.constant 0 : index
    %1 = vector.load %arg3[%c1, %c0_1] : memref<3x128xf32, #tpu.memory_space<vmem>>, vector<1x128xf32>
    %c2 = arith.constant 2 : index
    %c0_2 = arith.constant 0 : index
    %2 = vector.load %arg3[%c2, %c0_2] : memref<3x128xf32, #tpu.memory_space<vmem>>, vector<1x128xf32>
    %c0_3 = arith.constant 0 : index
    %c0_4 = arith.constant 0 : index
    %3 = vector.load %arg1[%c0_3, %c0_4] : memref<16x128xbf16, #tpu.memory_space<vmem>>, vector<16x128xbf16>
    %c0_5 = arith.constant 0 : index
    %c0_6 = arith.constant 0 : index
    %4 = vector.load %arg2[%c0_5, %c0_6] : memref<128x128xbf16, #tpu.memory_space<vmem>>, vector<128x128xbf16>
    %cst = arith.constant dense<0.000000e+00> : vector<16x128xf32>
    %5 = tpu.matmul %3, %4, %cst {dimension_numbers = #tpu.dot_dimension_numbers<[1], [0], [0], [1], [0, 0, 1, 1], [], []>} : vector<16x128xbf16>, vector<128x128xbf16>, vector<16x128xf32> -> vector<16x128xf32>
    %6 = vector.broadcast %0 : vector<1x128xf32> to vector<16x128xf32>
    %7 = arith.addf %5, %6 : vector<16x128xf32>
    %cst_7 = arith.constant dense<0.000000e+00> : vector<16xf32>
    %8 = vector.multi_reduction <add>, %7, %cst_7 [1] : vector<16x128xf32> to vector<16xf32>
    %9 = vector.shape_cast %8 : vector<16xf32> to vector<16x1xf32>
    %cst_8 = arith.constant 1.562500e-02 : f32
    %10 = vector.broadcast %cst_8 : f32 to vector<16x1xf32>
    %11 = arith.mulf %9, %10 : vector<16x1xf32>
    %12 = arith.mulf %7, %7 : vector<16x128xf32>
    %cst_9 = arith.constant dense<0.000000e+00> : vector<16xf32>
    %13 = vector.multi_reduction <add>, %12, %cst_9 [1] : vector<16x128xf32> to vector<16xf32>
    %14 = vector.shape_cast %13 : vector<16xf32> to vector<16x1xf32>
    %cst_10 = arith.constant 1.562500e-02 : f32
    %15 = vector.broadcast %cst_10 : f32 to vector<16x1xf32>
    %16 = arith.mulf %14, %15 : vector<16x1xf32>
    %17 = arith.mulf %11, %11 : vector<16x1xf32>
    %18 = arith.subf %16, %17 : vector<16x1xf32>
    %cst_11 = arith.constant 0.000000e+00 : f32
    %19 = vector.broadcast %cst_11 : f32 to vector<16x1xf32>
    %20 = arith.maximumf %18, %19 : vector<16x1xf32>
    %21 = vector.broadcast %11 : vector<16x1xf32> to vector<16x128xf32>
    %22 = arith.subf %7, %21 : vector<16x128xf32>
    %cst_12 = arith.constant 9.99999974E-6 : f32
    %23 = vector.broadcast %cst_12 : f32 to vector<16x1xf32>
    %24 = arith.addf %20, %23 : vector<16x1xf32>
    %25 = math.rsqrt %24 : vector<16x1xf32>
    %26 = vector.broadcast %25 : vector<16x1xf32> to vector<16x128xf32>
    %27 = arith.mulf %22, %26 : vector<16x128xf32>
    %28 = vector.broadcast %1 : vector<1x128xf32> to vector<16x128xf32>
    %29 = arith.mulf %27, %28 : vector<16x128xf32>
    %30 = vector.broadcast %2 : vector<1x128xf32> to vector<16x128xf32>
    %31 = arith.addf %29, %30 : vector<16x128xf32>
    %cst_13 = arith.constant 0.000000e+00 : f32
    %32 = vector.broadcast %cst_13 : f32 to vector<16x128xf32>
    %33 = arith.maximumf %31, %32 : vector<16x128xf32>
    %34 = arith.truncf %33 : vector<16x128xf32> to vector<16x128xbf16>
    %c0_14 = arith.constant 0 : index
    %c0_15 = arith.constant 0 : index
    %35 = vector.load %arg4[%c0_14, %c0_15] : memref<128x128xbf16, #tpu.memory_space<vmem>>, vector<128x128xbf16>
    %cst_16 = arith.constant dense<0.000000e+00> : vector<16x128xf32>
    %36 = tpu.matmul %34, %35, %cst_16 {dimension_numbers = #tpu.dot_dimension_numbers<[1], [0], [0], [1], [0, 0, 1, 1], [], []>} : vector<16x128xbf16>, vector<128x128xbf16>, vector<16x128xf32> -> vector<16x128xf32>
    %c0_17 = arith.constant 0 : index
    %c0_18 = arith.constant 0 : index
    %37 = vector.load %arg5[%c0_17, %c0_18] : memref<1x128xf32, #tpu.memory_space<vmem>>, vector<1x128xf32>
    %38 = vector.broadcast %37 : vector<1x128xf32> to vector<16x128xf32>
    %39 = arith.addf %36, %38 : vector<16x128xf32>
    %c0_19 = arith.constant 0 : index
    %c0_20 = arith.constant 0 : index
    %40 = vector.load %arg6[%c0_19, %c0_20] : memref<16x128xf32, #tpu.memory_space<vmem>>, vector<16x128xf32>
    tpu.vector_store %arg6[%c0_19, %c0_20], %39 {strides = array<i32>} : memref<16x128xf32, #tpu.memory_space<vmem>>, vector<16x128xf32>,
    return
  }
  func.func @transform_0(%arg0: i32) -> (i32, i32) {
    %c0_i32 = arith.constant 0 : i32
    %c0_i32_0 = arith.constant 0 : i32
    return %arg0, %c0_i32 : i32, i32
  }
  func.func @transform_1(%arg0: i32) -> (i32, i32) {
    %c0_i32 = arith.constant 0 : i32
    %c0_i32_0 = arith.constant 0 : i32
    %c0_i32_1 = arith.constant 0 : i32
    return %c0_i32, %c0_i32_0 : i32, i32
  }
  func.func @transform_2(%arg0: i32) -> (i32, i32) {
    %c0_i32 = arith.constant 0 : i32
    %c0_i32_0 = arith.constant 0 : i32
    %c0_i32_1 = arith.constant 0 : i32
    return %c0_i32, %c0_i32_0 : i32, i32
  }
  func.func @transform_3(%arg0: i32) -> (i32, i32) {
    %c0_i32 = arith.constant 0 : i32
    %c0_i32_0 = arith.constant 0 : i32
    %c0_i32_1 = arith.constant 0 : i32
    return %c0_i32, %c0_i32_0 : i32, i32
  }
  func.func @transform_4(%arg0: i32) -> (i32, i32) {
    %c0_i32 = arith.constant 0 : i32
    %c0_i32_0 = arith.constant 0 : i32
    %c0_i32_1 = arith.constant 0 : i32
    return %c0_i32, %c0_i32_0 : i32, i32
  }
  func.func @transform_5(%arg0: i32) -> (i32, i32) {
    %c0_i32 = arith.constant 0 : i32
    %c0_i32_0 = arith.constant 0 : i32
    return %arg0, %c0_i32 : i32, i32
  }
}

</mosaic_0001>

<bundles_post_ra>
// kernel: tpu_custom_call.1
= control target key start
LH: loop header
LB: loop body
LE: loop exit
PB: predicated region body
PF: predicated region fallthrough
CT: control target
= control target key end

     0   :  { %10 = vsyncpa [#allocation3], 0  ;;  %s625_s0 = inlined_call_operand.hbm [shape: bf16[16,128], index: 0, kind: input, shape index: {}]   ;;  %s626_s1 = inlined_call_operand.hbm [shape: bf16[128,128], index: 1, kind: input, shape index: {}]   ;;  %s627_s2 = inlined_call_operand.hbm [shape: f32[3,128], index: 2, kind: input, shape index: {}]   ;;  %s628_s3 = inlined_call_operand.hbm [shape: bf16[128,128], index: 3, kind: input, shape index: {}]   ;;  %s629_s4 = inlined_call_operand.vmem [shape: f32[1,128], index: 4, kind: input, shape index: {}]   ;;  %s630_s5 = inlined_call_operand.hbm [shape: f32[16,128], index: 5, kind: output, shape index: {}]  }
   0x1   :  { %11 = vsyncpa [#allocation6], 0 }
   0x2   :  { %12 = vsyncpa [#allocation9], 0 }
   0x3   :  { %13 = vsyncpa [#allocation4], 0  ;;  %s31_s20 = sshll.u32 %s626_s1, 4  ;;  %s562_s21 = smov [#allocation5]   ;;  %s32_s20 = int_to_ptr.hbm [resolvable:$true] %s31_s20 }
   0x4   :  { %s33_s22 = sshll.u32 %s562_s21, 4  ;;  %s18_s25 = sshll.u32 %s625_s0, 4  ;;  %s34_s22 = int_to_ptr.vmem [resolvable:$true] %s33_s22  ;;  %s19_s25 = int_to_ptr.hbm [resolvable:$true] %s18_s25 }
   0x5   :  { %s563_s26 = smov 64   ;;  %s564_s27 = smov 4  }
   0x6   :  { %39 = dma.hbm_to_vmem [thread:$0]  %s32_s20, 1024, %s34_s22, [#allocation6], %s563_s26, %s563_s26, %s564_s27  }
   0x7   :  { %s565_s28 = smov [#allocation2]   ;;  %s45_s7 = sshll.u32 %s627_s2, 4  ;;  %s46_s7 = int_to_ptr.hbm [resolvable:$true] %s45_s7 }
   0x8   :  { %s20_s29 = sshll.u32 %s565_s28, 4  ;;  %s55_s9 = sshll.u32 %s628_s3, 4  ;;  %s21_s29 = int_to_ptr.vmem [resolvable:$true] %s20_s29  ;;  %s56_s9 = int_to_ptr.hbm [resolvable:$true] %s55_s9 }
   0x9   :  { %26 = dma.hbm_to_vmem [thread:$0]  %s19_s25, 128, %s21_s29, [#allocation3], %s563_s26, %s563_s26, %s564_s27  }
   0xa   :  { %s566_s10 = smov [#allocation7]   ;;  %s567_s0 = smov [#allocation8]  }
   0xb   :  { %s47_s11 = sshll.u32 %s566_s10, 4  ;;  %s57_s12 = sshll.u32 %s567_s0, 4  ;;  %s48_s11 = int_to_ptr.vmem [resolvable:$true] %s47_s11  ;;  %s58_s12 = int_to_ptr.vmem [resolvable:$true] %s57_s12 }
   0xc   :  { %50 = dma.hbm_to_vmem [thread:$0]  %s46_s7, 64, %s48_s11, [#allocation6]  }
   0xd   :  { %63 = dma.hbm_to_vmem [thread:$0]  %s56_s9, 1024, %s58_s12, [#allocation9], %s563_s26, %s563_s26, %s564_s27  }
   0xe   :  { %554 = dma.done.wait [#allocation3], 128  }
   0xf   :  { %555 = vsyncadd [#allocation3], 4294967168 }
  0x10   :  { %556 = dma.done.wait [#allocation6], 1088  }
  0x11   :  { %557 = vsyncadd [#allocation6], 4294966208 }
  0x12   :  { %558 = dma.done.wait [#allocation9], 1024  }
  0x13   :  { %559 = vsyncadd [#allocation9], 4294966272  ;;  %v408_v0 = vld [vmem:[#allocation5 + $0x38] sm:$0xff]  ;;  %v407_v1 = vld [vmem:[#allocation5 + $0x30] sm:$0xff]  ;;  %s568_s13 = smov [#allocation10]   ;;  %s317_s17 = sshll.u32 %s630_s5, 4  ;;  %s318_s17 = int_to_ptr.hbm [resolvable:$true] %s317_s17 }
  0x14   :  { %158 = vmatpush.bf16.msra.mxu0 %v408_v0  ;;  %v406_v2 = vld [vmem:[#allocation5 + $0x28] sm:$0xff]  ;;  %v405_v3 = vld [vmem:[#allocation5 + $0x20] sm:$0xff]  ;;  %v404_v4 = vld [vmem:[#allocation5 + $0x18] sm:$0xff]  ;;  %s315_s14 = sshll.u32 %s568_s13, 4  ;;  %s569_s18 = smov 128   ;;  %s316_s14 = int_to_ptr.vmem [resolvable:$true] %s315_s14 }
  0x15   :  { %v403_v5 = vld [vmem:[#allocation5 + $0x10] sm:$0xff]  ;;  %v402_v6 = vld [vmem:[#allocation5 + $0x8] sm:$0xff]  ;;  %v401_v7 = vld [vmem:[#allocation5] sm:$0xff]  ;;  %s570_s19 = smov 8  }
  0x16   :  { %v400_v8 = vld [vmem:[#allocation2] sm:$0xff]  ;;  %v426_v9 = vld [vmem:[#allocation7] ss:$0 sm:$0xff]  ;;  %v414_v18 = vld [vmem:[#allocation8 + $0x28] sm:$0xff] }
  0x17   :  { %v416_v16 = vld [vmem:[#allocation8 + $0x38] sm:$0xff]  ;;  %v415_v17 = vld [vmem:[#allocation8 + $0x30] sm:$0xff]  ;;  %v413_v19 = vld [vmem:[#allocation8 + $0x20] sm:$0xff] }
  0x18   :  { %159 = vmatpush.bf16.msra.mxu0 %v407_v1  ;;  %295 = vmatpush.bf16.msra.mxu1 %v416_v16  ;;  %v412_v20 = vld [vmem:[#allocation8 + $0x18] sm:$0xff]  ;;  %v411_v26 = vld [vmem:[#allocation8 + $0x10] sm:$0xff]  ;;  %v410_v28 = vld [vmem:[#allocation8 + $0x8] sm:$0xff] }
  0x19   :  { %v409_v33 = vld [vmem:[#allocation8] sm:$0xff]  ;;  %v427_v53 = vld [vmem:[#allocation7 + $0x1] ss:$0 sm:$0xff]  ;;  %v428_v58 = vld [vmem:[#allocation7 + $0x2] ss:$0 sm:$0xff] }
  0x1c   :  { %160 = vmatpush.bf16.msra.mxu0 %v406_v2  ;;  %296 = vmatpush.bf16.msra.mxu1 %v415_v17 }
  0x20   :  { %161 = vmatpush.bf16.msra.mxu0 %v405_v3  ;;  %297 = vmatpush.bf16.msra.mxu1 %v414_v18  ;;  %v429_v3 = vld [vmem:[%s629_s4] ss:$0 sm:$0xff] }
  0x24   :  { %162 = vmatpush.bf16.msra.mxu0 %v404_v4  ;;  %298 = vmatpush.bf16.msra.mxu1 %v413_v19 }
  0x28   :  { %163 = vmatpush.bf16.msra.mxu0 %v403_v5  ;;  %299 = vmatpush.bf16.msra.mxu1 %v412_v20 }
  0x2c   :  { %164 = vmatpush.bf16.msra.mxu0 %v402_v6  ;;  %300 = vmatpush.bf16.msra.mxu1 %v411_v26 }
  0x30   :  { %165 = vmatpush.bf16.msra.mxu0 %v401_v7  ;;  %301 = vmatpush.bf16.msra.mxu1 %v410_v28 }
  0x33   :  { %166 = vmatmul.bf16.vlgmr.msra.gmra.mxu0 %v400_v8 }
  0x34   :  { %302 = vmatpush.bf16.msra.mxu1 %v409_v33 }
  0xb0   :  { %v167_v10 = vpop.f32.mrf.mxu0 }
  0xb1   :  { %v168_v11 = vadd.f32 %v426_v9, %v167_v10 }
  0xb3   :  { %172 = vadd.xlane.f32.xlu0 %v168_v11  ;;  %v178_v12 = vmul.f32 %v168_v11, %v168_v11 }
  0xb5   :  { %180 = vadd.xlane.f32.xlu1 %v178_v12 }
  0xb8   :  { %v169_v13 = vpop.f32.mrf.mxu0 }
  0xb9   :  { %v613_v14 = vadd.f32 %v426_v9, %v169_v13 }
  0xbb   :  { %174 = vadd.xlane.f32.xlu0 %v613_v14  ;;  %v179_v15 = vmul.f32 %v613_v14, %v613_v14 }
  0xbd   :  { %182 = vadd.xlane.f32.xlu1 %v179_v15 }
 0x126   :  { %v173_v21 = vpop.xlane.xlu0 %172 }
 0x127   :  { %v176_v22 = vmul.f32 0.015625, %v173_v21 }
 0x128   :  { %v181_v23 = vpop.xlane.xlu1 %180 }
 0x129   :  { %v186_v24 = vmul.f32 %v176_v22, %v176_v22  ;;  %v184_v25 = vmul.f32 0.015625, %v181_v23  ;;  %v192_v50 = vsub.f32 %v168_v11, %v176_v22 }
 0x12b   :  { %v188_v27 = vsub.f32 %v184_v25, %v186_v24 }
 0x12d   :  { %v190_v29 = vmax.f32 %v188_v27, 0.0 }
 0x12e   :  { %v175_v30 = vpop.xlane.xlu0 %174 }
 0x12f   :  { %v194_v31 = vadd.f32 1e-05, %v190_v29  ;;  %v177_v32 = vmul.f32 0.015625, %v175_v30 }
 0x130   :  { %v183_v34 = vpop.xlane.xlu1 %182 }
 0x131   :  { %430 = vrsqrt.f32 %v194_v31  ;;  %v187_v35 = vmul.f32 %v177_v32, %v177_v32  ;;  %v185_v36 = vmul.f32 0.015625, %v183_v34  ;;  %vm202_vm1 = vweird.f32 %v194_v31 }
 0x132   :  { %v193_v56 = vsub.f32 %v613_v14, %v177_v32 }
 0x133   :  { %v189_v37 = vsub.f32 %v185_v36, %v187_v35 }
 0x135   :  { %v191_v38 = vmax.f32 %v189_v37, 0.0 }
 0x137   :  { %v431_v39 = vpop.eup %430  ;;  %v195_v41 = vadd.f32 1e-05, %v191_v38 }
 0x138   :  { %v197_v40 = vmul.f32 %v431_v39, %v194_v31  ;;  %vm203_vm0 = vweird.f32 %v431_v39 }
 0x139   :  { %432 = vrsqrt.f32 %v195_v41  ;;  %vm204_vm2 = vmor %vm202_vm1, %vm203_vm0  ;;  %vm212_vm4 = vweird.f32 %v195_v41 }
 0x13a   :  { %v198_v42 = vmul.f32 %v431_v39, %v197_v40 }
 0x13c   :  { %v199_v43 = vmul.f32 0.5, %v198_v42 }
 0x13e   :  { %v200_v44 = vsub.f32 1.5, %v199_v43 }
 0x13f   :  { %v433_v45 = vpop.eup %432 }
 0x140   :  { %v201_v46 = vmul.f32 %v431_v39, %v200_v44  ;;  %v207_v47 = vmul.f32 %v433_v45, %v195_v41  ;;  %vm213_vm3 = vweird.f32 %v433_v45 }
 0x141   :  { %vm214_vm5 = vmor %vm212_vm4, %vm213_vm3 }
 0x142   :  { %v208_v48 = vmul.f32 %v433_v45, %v207_v47  ;;  %v205_v49 = vsel %vm204_vm2, %v431_v39, %v201_v46 }
 0x143   :  { %v216_v52 = vmul.f32 %v205_v49, %v192_v50 }
 0x144   :  { %v209_v51 = vmul.f32 0.5, %v208_v48 }
 0x145   :  { %v219_v57 = vmul.f32 %v427_v53, %v216_v52 }
 0x146   :  { %v210_v54 = vsub.f32 1.5, %v209_v51 }
 0x147   :  { %v222_v62 = vadd.f32 %v428_v58, %v219_v57 }
 0x148   :  { %v211_v55 = vmul.f32 %v433_v45, %v210_v54 }
 0x149   :  { %v224_v0 = vmax.f32 %v222_v62, 0.0 }
 0x14a   :  { %v215_v59 = vsel %vm214_vm5, %v433_v45, %v211_v55 }
 0x14b   :  { %v217_v60 = vmul.f32 %v215_v59, %v193_v56 }
 0x14d   :  { %v220_v61 = vmul.f32 %v427_v53, %v217_v60 }
 0x14f   :  { %v223_v63 = vadd.f32 %v428_v58, %v220_v61 }
 0x151   :  { %v225_v1 = vmax.f32 %v223_v63, 0.0 }
 0x153   :  { %v226_v2 = vpack.c.bf16 %v225_v1, %v224_v0 }
 0x155   :  { %303 = vmatmul.bf16.vlgmr.msra.gmra.mxu1 %v226_v2 }
 0x1d2   :  { %v304_v4 = vpop.f32.mrf.mxu1 }
 0x1d3   :  { %v305_v5 = vadd.f32 %v429_v3, %v304_v4 }
 0x1d5   :  { %309 = vst [vmem:[#allocation10] sm:$0xff] %v305_v5 }
 0x1da   :  { %v306_v6 = vpop.f32.mrf.mxu1 }
 0x1db   :  { %v307_v7 = vadd.f32 %v429_v3, %v306_v6 }
 0x1dd   :  { %310 = vst [vmem:[#allocation10 + $0x8] sm:$0xff] %v307_v7 }
 0x1de   :  { %323 = dma.vmem_to_hbm [thread:$0]  %s316_s14, 256, %s318_s17, [#allocation4], %s569_s18, %s569_s18, %s570_s19  }
 0x1df   :  { %560 = dma.done.wait [#allocation4], 256  }
 0x1e0   :  { %561 = vsyncadd [#allocation4], 4294967040 }
 0x1e1   :  { %328 = vsyncpa [#allocation3], 1 }
 0x1e2   :  { %329 = vsyncpa [#allocation6], 1 }
 0x1e3   :  { %330 = vsyncpa [#allocation9], 1 }
 0x1e4   :  { %331 = vsyncpa [#allocation4], 1 }

</bundles_post_ra>
